<compile_context>
chip_gen: v7x
topology: tpu7x:2x2x1
jax: 0.10.0
libtpu: 0.0.40
codegen_flags: <defaults>
</compile_context>

<pallas_src>
import functools

import jax
import jax.numpy as jnp
from jax import lax
from jax.experimental import pallas as pl
from jax.experimental.pallas import tpu as pltpu


# ---------------------------------------------------------------------------
# Helpers
# ---------------------------------------------------------------------------

def _round_up(n, m):
    return ((n + m - 1) // m) * m


def _pad2d(a, rows, cols):
    return jnp.pad(a, ((0, rows - a.shape[0]), (0, cols - a.shape[1])))


def _clamp_vmem(est_bytes):
    est = int(est_bytes * 1.5) + (2 << 20)           # headroom for compiler temps
    return max(min(est, 100 * 1024 * 1024), 8 * 1024 * 1024)


# ---------------------------------------------------------------------------
# Fused 2-layer GCN encoder kernel (one grid step per view)
# ---------------------------------------------------------------------------

def _fused_encoder_kernel(adj_hbm, d_ref, x_ref, w1_ref, b1_ref, w2_ref, b2_ref,
                          z_ref, abuf, copy_sem, p1_ref, p2_ref, *, tm, nr):
    """z = relu(A_hat @ relu(A_hat @ (X W1) + b1) W2 + b2) with
    A_hat @ M computed as d ⊙ ((A+I) @ (d ⊙ M)), adjacency streamed from HBM."""
    v = pl.program_id(0)

    def fetch(r, slot):
        row0 = pl.multiple_of(r * tm, tm)
        pltpu.make_async_copy(
            adj_hbm.at[v, pl.ds(row0, tm), :], abuf.at[slot], copy_sem.at[slot],
        ).start()

    def wait(slot):
        pltpu.make_async_copy(
            adj_hbm.at[v, pl.ds(0, tm), :], abuf.at[slot], copy_sem.at[slot],
        ).wait()

    # Prime the adjacency stream; DMA overlaps with phase-0 compute below.
    fetch(0, 0)

    # -- Phase 0: P1 = d ⊙ (X @ W1), row-tiled (bounds MXU temporaries) ------
    @pl.loop(0, nr)
    def _(r):
        row0 = pl.multiple_of(r * tm, tm)
        xw = jnp.dot(x_ref[pl.ds(row0, tm), :], w1_ref[...],
                     preferred_element_type=jnp.float32)
        p1_ref[pl.ds(row0, tm), :] = (
            d_ref[pl.ds(row0, tm), :] * xw).astype(p1_ref.dtype)

    # -- Phase 1 (layer 1): stream adjacency row blocks ----------------------
    #    H1_r = relu(d_r ⊙ (adj_r @ P1) + b1);  P2_r = d_r ⊙ (H1_r @ W2)
    @pl.loop(0, nr)
    def _(r):
        slot = r % 2
        wait(slot)
        fetch((r + 1) % nr, 1 - slot)   # last iteration prefetches block 0 for phase 2
        row0 = pl.multiple_of(r * tm, tm)
        d_r = d_ref[pl.ds(row0, tm), :]
        agg = jnp.dot(abuf[slot], p1_ref[...], preferred_element_type=jnp.float32)
        h = jnp.maximum(d_r * agg + b1_ref[...], 0.0)          # ReLU in f32 (VPU)
        hw = jnp.dot(h.astype(w2_ref.dtype), w2_ref[...],
                     preferred_element_type=jnp.float32)
        p2_ref[pl.ds(row0, tm), :] = (d_r * hw).astype(p2_ref.dtype)

    # -- Phase 2 (layer 2): second adjacency pass -> final embeddings --------
    @pl.loop(0, nr)
    def _(r):
        slot = (nr + r) % 2
        wait(slot)

        @pl.when(r + 1 < nr)
        def _():
            fetch(r + 1, 1 - slot)

        row0 = pl.multiple_of(r * tm, tm)
        d_r = d_ref[pl.ds(row0, tm), :]
        agg = jnp.dot(abuf[slot], p2_ref[...], preferred_element_type=jnp.float32)
        z = jnp.maximum(d_r * agg + b2_ref[...], 0.0)
        z_ref[pl.ds(row0, tm), :] = z.astype(z_ref.dtype)


def fused_gcn_encoder(adj3, d3, x3, w1, b1, w2, b2, *, tm):
    """Batched (3-view) fused 2-layer GCN.

    adj3: [V,Np,Np] bf16 (A+I, unnormalized, stays in HBM),
    d3: [V,Np,1] f32 (D^{-1/2}), x3: [V,Np,Fp] bf16.
    """
    v, n_pad, _ = adj3.shape
    f_pad = x3.shape[-1]
    h_pad = w1.shape[1]
    assert n_pad % tm == 0
    nr = n_pad // tm

    kernel = functools.partial(_fused_encoder_kernel, tm=tm, nr=nr)

    flops = 2 * v * (n_pad * f_pad * h_pad        # X @ W1
                     + 2 * n_pad * n_pad * h_pad  # two adjacency matmuls
                     + n_pad * h_pad * h_pad)     # H1 @ W2
    bytes_accessed = v * (2 * n_pad * n_pad * 2   # adjacency read twice (bf16)
                          + n_pad * f_pad * 2     # x (bf16)
                          + n_pad * 4             # d
                          + n_pad * h_pad * 4)    # z writeback (f32)
    bytes_accessed += (f_pad * h_pad + h_pad * h_pad) * 2 + 2 * h_pad * 4

    vmem_est = (2 * tm * n_pad * 2                # adj double buffer (bf16)
                + 2 * n_pad * f_pad * 2           # x (pipeline double-buffered)
                + 2 * n_pad * 4                   # d
                + 2 * n_pad * h_pad * 4           # z out (double-buffered, f32)
                + 2 * n_pad * h_pad * 2           # P1 + P2 scratch (bf16)
                + 2 * (f_pad * h_pad + h_pad * h_pad) * 2
                + 4 * h_pad * 4)

    return pl.pallas_call(
        kernel,
        out_shape=jax.ShapeDtypeStruct((v, n_pad, h_pad), jnp.float32),
        grid=(v,),
        in_specs=[
            pl.BlockSpec(memory_space=pl.ANY),                         # adj (HBM)
            pl.BlockSpec((None, n_pad, 1), lambda i: (i, 0, 0)),       # d^{-1/2}
            pl.BlockSpec((None, n_pad, f_pad), lambda i: (i, 0, 0)),   # x
            pl.BlockSpec((f_pad, h_pad), lambda i: (0, 0)),            # W1 (resident)
            pl.BlockSpec((1, h_pad), lambda i: (0, 0)),                # b1
            pl.BlockSpec((h_pad, h_pad), lambda i: (0, 0)),            # W2 (resident)
            pl.BlockSpec((1, h_pad), lambda i: (0, 0)),                # b2
        ],
        out_specs=pl.BlockSpec((None, n_pad, h_pad), lambda i: (i, 0, 0)),
        scratch_shapes=[
            pltpu.VMEM((2, tm, n_pad), jnp.bfloat16),   # adjacency double buffer
            pltpu.SemaphoreType.DMA((2,)),
            pltpu.VMEM((n_pad, h_pad), jnp.bfloat16),   # P1 = d ⊙ (X W1)
            pltpu.VMEM((n_pad, h_pad), jnp.bfloat16),   # P2 = d ⊙ (H1 W2)
        ],
        compiler_params=pltpu.CompilerParams(
            dimension_semantics=("parallel",),
            vmem_limit_bytes=_clamp_vmem(vmem_est)),
        cost_estimate=pl.CostEstimate(flops=int(flops), transcendentals=0,
                                      bytes_accessed=int(bytes_accessed)),
    )(adj3, d3, x3, w1, b1, w2, b2)


# ---------------------------------------------------------------------------
# Projection head kernel (row-tiled): fc2(elu(fc1(z)))
# ---------------------------------------------------------------------------

def _project_kernel(z_ref, w1_ref, b1_ref, w2_ref, b2_ref, o_ref):
    h = jnp.dot(z_ref[...], w1_ref[...], preferred_element_type=jnp.float32)
    h = h + b1_ref[...]
    h = jnp.where(h > 0.0, h, jnp.exp(jnp.minimum(h, 0.0)) - 1.0)   # ELU(alpha=1)
    out = jnp.dot(h.astype(w2_ref.dtype), w2_ref[...],
                  preferred_element_type=jnp.float32) + b2_ref[...]
    o_ref[...] = out.astype(o_ref.dtype)


def project_head(z, w1, b1, w2, b2, *, tp):
    n_pad, h_pad = z.shape
    p_pad = w1.shape[1]
    assert n_pad % tp == 0

    flops = 2 * n_pad * (h_pad * p_pad + p_pad * h_pad)
    bytes_accessed = n_pad * h_pad * 2 + n_pad * h_pad * 4 \
        + 2 * h_pad * p_pad * 2 + (p_pad + h_pad) * 4
    vmem_est = (2 * tp * h_pad * 2 + 2 * tp * h_pad * 4 + tp * p_pad * 4
                + 2 * 2 * h_pad * p_pad * 2 + 2 * (p_pad + h_pad) * 4)

    return pl.pallas_call(
        _project_kernel,
        out_shape=jax.ShapeDtypeStruct((n_pad, h_pad), jnp.float32),
        grid=(n_pad // tp,),
        in_specs=[
            pl.BlockSpec((tp, h_pad), lambda i: (i, 0)),
            pl.BlockSpec((h_pad, p_pad), lambda i: (0, 0)),   # fc1 W (resident)
            pl.BlockSpec((1, p_pad), lambda i: (0, 0)),       # fc1 b
            pl.BlockSpec((p_pad, h_pad), lambda i: (0, 0)),   # fc2 W (resident)
            pl.BlockSpec((1, h_pad), lambda i: (0, 0)),       # fc2 b
        ],
        out_specs=pl.BlockSpec((tp, h_pad), lambda i: (i, 0)),
        compiler_params=pltpu.CompilerParams(
            dimension_semantics=("parallel",),
            vmem_limit_bytes=_clamp_vmem(vmem_est)),
        cost_estimate=pl.CostEstimate(flops=int(flops),
                                      transcendentals=int(n_pad * p_pad),
                                      bytes_accessed=int(bytes_accessed)),
    )(z, w1, b1, w2, b2)


# ---------------------------------------------------------------------------
# Glue (plain JAX): augmentors, parameter init
# ---------------------------------------------------------------------------

def make_augmentor(key, pe, pf):
    """Deterministic EdgeRemoving(pe) -> FeatureMasking(pf) augmentor.
    NOTE: keys are fixed at construction (fine for this test; thread a fresh
    key per training step in real GRACE training)."""
    k_edge, k_feat = jax.random.split(key)

    def aug(x, edge_index, edge_weight):
        num_edges = edge_index.shape[1]
        if edge_weight is None:
            edge_weight = jnp.ones((num_edges,), dtype=jnp.float32)
        keep_edge = jax.random.bernoulli(k_edge, 1.0 - pe, (num_edges,))
        ew = jnp.where(keep_edge, edge_weight, 0.0)
        keep_feat = jax.random.bernoulli(k_feat, 1.0 - pf, (x.shape[1],))
        xm = x * keep_feat.astype(x.dtype)[None, :]
        return xm, edge_index, ew

    return aug


def linear_init(key, fan_in, fan_out):
    """PyTorch nn.Linear default init: U(-1/sqrt(fan_in), 1/sqrt(fan_in))."""
    kw, kb = jax.random.split(key)
    bound = 1.0 / jnp.sqrt(jnp.float32(fan_in))
    w = jax.random.uniform(kw, (fan_in, fan_out), jnp.float32, -bound, bound)
    b = jax.random.uniform(kb, (fan_out,), jnp.float32, -bound, bound)
    return w, b


# ---------------------------------------------------------------------------
# Encoder module (JAX/Pallas port of GRACE.py::Encoder)
# ---------------------------------------------------------------------------

class Encoder:
    def __init__(self, key, in_dim, hidden_dim, proj_dim, augmentor):
        self.in_dim = in_dim
        self.hidden_dim = hidden_dim
        self.proj_dim = proj_dim
        # Lane-dense padded parameter dims (multiples of 128).
        # TODO(synk): if the production hidden_dim is genuinely tiny, the
        # 128-lane padding wastes MXU FLOPs on v5e; prefer a CSR SpMM there.
        self.f_pad = _round_up(in_dim, 128)
        self.h_pad = _round_up(hidden_dim, 128)
        self.p_pad = _round_up(proj_dim, 128)

        k1, k2, k3, k4 = jax.random.split(key, 4)
        gcn_w1, gcn_b1 = linear_init(k1, in_dim, hidden_dim)
        gcn_w2, gcn_b2 = linear_init(k2, hidden_dim, hidden_dim)
        fc1_w, fc1_b = linear_init(k3, hidden_dim, proj_dim)
        fc2_w, fc2_b = linear_init(k4, proj_dim, hidden_dim)

        # Zero-padded params; weights bf16 (MXU operands), biases f32 (VPU adds).
        self.gcn_w1 = _pad2d(gcn_w1, self.f_pad, self.h_pad).astype(jnp.bfloat16)
        self.gcn_b1 = jnp.pad(gcn_b1, (0, self.h_pad - hidden_dim)).reshape(1, -1)
        self.gcn_w2 = _pad2d(gcn_w2, self.h_pad, self.h_pad).astype(jnp.bfloat16)
        self.gcn_b2 = jnp.pad(gcn_b2, (0, self.h_pad - hidden_dim)).reshape(1, -1)
        self.fc1_w = _pad2d(fc1_w, self.h_pad, self.p_pad).astype(jnp.bfloat16)
        self.fc1_b = jnp.pad(fc1_b, (0, self.p_pad - proj_dim)).reshape(1, -1)
        self.fc2_w = _pad2d(fc2_w, self.p_pad, self.h_pad).astype(jnp.bfloat16)
        self.fc2_b = jnp.pad(fc2_b, (0, self.h_pad - hidden_dim)).reshape(1, -1)

        self.augmentor = augmentor

        self._forward_jit = jax.jit(self._forward_impl)
        self._project_jit = jax.jit(self._project_impl)

    # -- forward --------------------------------------------------------------
    def _forward_impl(self, x, edge_index, edge_weight):
        aug1, aug2 = self.augmentor
        x1, _, ew1 = aug1(x, edge_index, edge_weight)
        x2, _, ew2 = aug2(x, edge_index, edge_weight)

        n = x.shape[0]
        tm = 128 if n <= 128 else (256 if n <= 4096 else 512)   # adjacency row tile
        n_pad = _round_up(n, tm)

        x3 = jnp.stack([x, x1, x2], axis=0)                 # [3, N, F]
        ew3 = jnp.stack([edge_weight, ew1, ew2], axis=0)    # [3, E]

        # Single fused O(E) scatter per view into the pre-padded bf16 buffer:
        # edge weights + self-loops, no dense +eye / pad / cast passes.
        src, dst = edge_index[0], edge_index[1]
        diag = jnp.arange(n, dtype=src.dtype)
        rows = jnp.concatenate([src, diag])
        cols = jnp.concatenate([dst, diag])

        def densify(ew):
            vals = jnp.concatenate([ew, jnp.ones((n,), ew.dtype)]).astype(jnp.bfloat16)
            a = jnp.zeros((n_pad, n_pad), jnp.bfloat16)
            return a.at[rows, cols].add(vals)

        a3p = jax.vmap(densify)(ew3)                        # [3, Np, Np] bf16

        # Degrees in O(E) (row degree of A+I), no dense row-sum pass.
        deg = jax.vmap(lambda ew: jax.ops.segment_sum(ew, src, num_segments=n))(ew3)
        deg = deg + 1.0
        dinv = jnp.where(deg > 0.0, lax.rsqrt(deg), 0.0)    # [3, N]
        d3p = jnp.pad(dinv, ((0, 0), (0, n_pad - n)))[..., None]   # [3, Np, 1] f32

        x3p = jnp.pad(x3, ((0, 0), (0, n_pad - n), (0, self.f_pad - self.in_dim))
                      ).astype(jnp.bfloat16)                # [3, Np, Fp] bf16

        z3 = fused_gcn_encoder(a3p, d3p, x3p,
                               self.gcn_w1, self.gcn_b1,
                               self.gcn_w2, self.gcn_b2, tm=tm)   # [3, Np, Hp] f32
        z3 = z3[:, :n, :self.hidden_dim]
        return z3[0], z3[1], z3[2]

    def forward(self, x, edge_index, edge_weight=None):
        if edge_weight is None:
            edge_weight = jnp.ones((edge_index.shape[1],), dtype=jnp.float32)
        return self._forward_jit(x, edge_index, edge_weight)

    # -- projection head --------------------------------------------------------
    def _project_impl(self, z):
        n = z.shape[0]
        tp = 256 if n <= 2048 else 1024
        n_pad = _round_up(n, tp)
        zp = jnp.pad(z, ((0, n_pad - n), (0, self.h_pad - self.hidden_dim))
                     ).astype(jnp.bfloat16)
        out = project_head(zp, self.fc1_w, self.fc1_b, self.fc2_w, self.fc2_b, tp=tp)
        return out[:n, :self.hidden_dim]

    def project(self, z):
        return self._project_jit(z)


# ---------------------------------------------------------------------------
# Main
# ---------------------------------------------------------------------------

if __name__ == "__main__":
    key = jax.random.PRNGKey(0)
    k_x, k_ei, k_aug1, k_aug2, k_params = jax.random.split(key, 5)

    N = 16          # nodes
    IN_DIM = 32     # input feature dim
    HIDDEN = 32     # hidden_dim
    PROJ = 16       # proj_dim
    E = 40          # number of edges

    x = jax.random.normal(k_x, (N, IN_DIM), dtype=jnp.float32)
    edge_index = jax.random.randint(k_ei, (2, E), 0, N, dtype=jnp.int32)
    edge_weight = None

    augmentor = (make_augmentor(k_aug1, pe=0.3, pf=0.3),
                 make_augmentor(k_aug2, pe=0.3, pf=0.3))
    model = Encoder(k_params, IN_DIM, HIDDEN, PROJ, augmentor)

    z, z1, z2 = model.forward(x, edge_index, edge_weight)
    h = model.project(z)   # projection head (fc1 / ELU / fc2)

    jax.block_until_ready((z, z1, z2, h))
    assert z.shape == (N, HIDDEN) and z1.shape == (N, HIDDEN) and z2.shape == (N, HIDDEN)
    assert h.shape == (N, HIDDEN)
    assert bool(jnp.all(jnp.isfinite(z))) and bool(jnp.all(jnp.isfinite(h)))
    print("KERNEL_OK")
</pallas_src>

<mosaic_0001>
module attributes {stable_mosaic.version = 11 : i64} {
  func.func @_fused_encoder_kernel(%arg0: i32, %arg1: memref<3x128x128xbf16, #tpu.memory_space<any>>, %arg2: memref<1x128x1xf32, #tpu.memory_space<vmem>>, %arg3: memref<1x128x128xbf16, #tpu.memory_space<vmem>>, %arg4: memref<128x128xbf16, #tpu.memory_space<vmem>>, %arg5: memref<1x128xf32, #tpu.memory_space<vmem>>, %arg6: memref<128x128xbf16, #tpu.memory_space<vmem>>, %arg7: memref<1x128xf32, #tpu.memory_space<vmem>>, %arg8: memref<1x128x128xf32, #tpu.memory_space<vmem>>, %arg9: memref<2x128x128xbf16, #tpu.memory_space<vmem>>, %arg10: memref<2x!tpu.dma_semaphore, #tpu.memory_space<semaphore_mem>>, %arg11: memref<128x128xbf16, #tpu.memory_space<vmem>>, %arg12: memref<128x128xbf16, #tpu.memory_space<vmem>>) attributes {dimension_semantics = [#tpu.dimension_semantics<parallel>], iteration_bounds = array<i64: 3>, scalar_prefetch = 0 : i64, scratch_operands = 4 : i64, tpu.core_type = #tpu.core_type<tc>, window_params = [{}, {transform_indices = @transform_1, window_bounds = array<i64: 1, 128, 1>}, {transform_indices = @transform_2, window_bounds = array<i64: 1, 128, 128>}, {pipeline_mode = #tpu.pipeline_mode<synchronous>, transform_indices = @transform_3, window_bounds = array<i64: 128, 128>}, {pipeline_mode = #tpu.pipeline_mode<synchronous>, transform_indices = @transform_4, window_bounds = array<i64: 1, 128>}, {pipeline_mode = #tpu.pipeline_mode<synchronous>, transform_indices = @transform_5, window_bounds = array<i64: 128, 128>}, {pipeline_mode = #tpu.pipeline_mode<synchronous>, transform_indices = @transform_6, window_bounds = array<i64: 1, 128>}, {transform_indices = @transform_7, window_bounds = array<i64: 1, 128, 128>}]} {
    %c0_i32 = arith.constant 0 : i32
    %0 = tpu.assume_multiple %c0_i32, 128 : i32
    %c0_i32_0 = arith.constant 0 : i32
    %c0_i32_1 = arith.constant 0 : i32
    %c0_i32_2 = arith.constant 0 : i32
    %1 = tpu.memref_slice %arg1[%arg0, %0, %c0_i32_2] : memref<3x128x128xbf16, #tpu.memory_space<any>> -> memref<1x128x128xbf16, #tpu.memory_space<any>>
    %2 = tpu.memref_squeeze %1 : memref<1x128x128xbf16, #tpu.memory_space<any>> -> memref<128x128xbf16, #tpu.memory_space<any>>
    %c0_i32_3 = arith.constant 0 : i32
    %c0_i32_4 = arith.constant 0 : i32
    %3 = tpu.memref_slice %arg9[%c0_i32_0, %c0_i32_3, %c0_i32_4] : memref<2x128x128xbf16, #tpu.memory_space<vmem>> -> memref<1x128x128xbf16, #tpu.memory_space<vmem>>
    %4 = tpu.memref_squeeze %3 : memref<1x128x128xbf16, #tpu.memory_space<vmem>> -> memref<128x128xbf16, #tpu.memory_space<vmem>>
    %5 = tpu.memref_slice %arg10[%c0_i32_1] : memref<2x!tpu.dma_semaphore, #tpu.memory_space<semaphore_mem>> -> memref<1x!tpu.dma_semaphore, #tpu.memory_space<semaphore_mem>>
    %6 = tpu.memref_squeeze %5 : memref<1x!tpu.dma_semaphore, #tpu.memory_space<semaphore_mem>> -> memref<!tpu.dma_semaphore, #tpu.memory_space<semaphore_mem>>
    tpu.enqueue_dma source(%2 : memref<128x128xbf16, #tpu.memory_space<any>>) target(%4 : memref<128x128xbf16, #tpu.memory_space<vmem>>) target_semaphore(%6 : memref<!tpu.dma_semaphore, #tpu.memory_space<semaphore_mem>>)
    %c0_i32_5 = arith.constant 0 : i32
    %c1_i32 = arith.constant 1 : i32
    %7 = arith.muli %c0_i32_5, %c1_i32 : i32
    %c0_i32_6 = arith.constant 0 : i32
    %8 = arith.addi %c0_i32_6, %7 : i32
    %c128_i32 = arith.constant 128 : i32
    %9 = arith.muli %8, %c128_i32 : i32
    %10 = tpu.assume_multiple %9, 128 : i32
    %c0 = arith.constant 0 : index
    %11 = arith.index_cast %10 : i32 to index
    %c0_7 = arith.constant 0 : index
    %12 = vector.load %arg3[%c0, %11, %c0_7] : memref<1x128x128xbf16, #tpu.memory_space<vmem>>, vector<1x128x128xbf16>
    %13 = vector.shape_cast %12 : vector<1x128x128xbf16> to vector<128x128xbf16>
    %c0_8 = arith.constant 0 : index
    %c0_9 = arith.constant 0 : index
    %14 = vector.load %arg4[%c0_8, %c0_9] : memref<128x128xbf16, #tpu.memory_space<vmem>>, vector<128x128xbf16>
    %cst = arith.constant dense<0.000000e+00> : vector<128x128xf32>
    %15 = tpu.matmul %13, %14, %cst {dimension_numbers = #tpu.dot_dimension_numbers<[1], [0], [0], [1], [0, 0, 1, 1], [], []>} : vector<128x128xbf16>, vector<128x128xbf16>, vector<128x128xf32> -> vector<128x128xf32>
    %c0_10 = arith.constant 0 : index
    %16 = arith.index_cast %10 : i32 to index
    %c0_11 = arith.constant 0 : index
    %17 = vector.load %arg2[%c0_10, %16, %c0_11] : memref<1x128x1xf32, #tpu.memory_space<vmem>>, vector<1x128x1xf32>
    %18 = vector.shape_cast %17 : vector<1x128x1xf32> to vector<128x1xf32>
    %19 = vector.broadcast %18 : vector<128x1xf32> to vector<128x128xf32>
    %20 = arith.mulf %19, %15 : vector<128x128xf32>
    %21 = arith.truncf %20 : vector<128x128xf32> to vector<128x128xbf16>
    %22 = arith.index_cast %10 : i32 to index
    %c0_12 = arith.constant 0 : index
    %23 = vector.load %arg11[%22, %c0_12] : memref<128x128xbf16, #tpu.memory_space<vmem>>, vector<128x128xbf16>
    tpu.vector_store %arg11[%22, %c0_12], %21 {strides = array<i32>} : memref<128x128xbf16, #tpu.memory_space<vmem>>, vector<128x128xbf16>,
    %c1_i32_13 = arith.constant 1 : i32
    %c0_i32_14 = arith.constant 0 : i32
    %c1_i32_15 = arith.constant 1 : i32
    %24 = arith.muli %c0_i32_14, %c1_i32_15 : i32
    %c0_i32_16 = arith.constant 0 : i32
    %25 = arith.addi %c0_i32_16, %24 : i32
    %c2_i32 = arith.constant 2 : i32
    %c0_i32_17 = arith.constant 0 : i32
    %26 = arith.cmpi eq, %c2_i32, %c0_i32_17 : i32
    %c1_i32_18 = arith.constant 1 : i32
    %27 = arith.select %26, %c1_i32_18, %c2_i32 : i32
    %28 = arith.remsi %25, %27 : i32
    %c0_i32_19 = arith.constant 0 : i32
    %29 = arith.cmpi ne, %28, %c0_i32_19 : i32
    %c0_i32_20 = arith.constant 0 : i32
    %30 = arith.cmpi slt, %28, %c0_i32_20 : i32
    %c0_i32_21 = arith.constant 0 : i32
    %31 = arith.cmpi slt, %27, %c0_i32_21 : i32
    %32 = arith.xori %30, %31 : i1
    %33 = arith.andi %32, %29 : i1
    %34 = arith.addi %28, %27 : i32
    %35 = arith.select %33, %34, %28 : i32
    %c0_i32_22 = arith.constant 0 : i32
    %c0_i32_23 = arith.constant 0 : i32
    %36 = tpu.memref_slice %arg1[%arg0, %c0_i32_22, %c0_i32_23] : memref<3x128x128xbf16, #tpu.memory_space<any>> -> memref<1x128x128xbf16, #tpu.memory_space<any>>
    %37 = tpu.memref_squeeze %36 : memref<1x128x128xbf16, #tpu.memory_space<any>> -> memref<128x128xbf16, #tpu.memory_space<any>>
    %c0_i32_24 = arith.constant 0 : i32
    %c0_i32_25 = arith.constant 0 : i32
    %38 = tpu.memref_slice %arg9[%35, %c0_i32_24, %c0_i32_25] : memref<2x128x128xbf16, #tpu.memory_space<vmem>> -> memref<1x128x128xbf16, #tpu.memory_space<vmem>>
    %39 = tpu.memref_squeeze %38 : memref<1x128x128xbf16, #tpu.memory_space<vmem>> -> memref<128x128xbf16, #tpu.memory_space<vmem>>
    %40 = tpu.memref_slice %arg10[%35] : memref<2x!tpu.dma_semaphore, #tpu.memory_space<semaphore_mem>> -> memref<1x!tpu.dma_semaphore, #tpu.memory_space<semaphore_mem>>
    %41 = tpu.memref_squeeze %40 : memref<1x!tpu.dma_semaphore, #tpu.memory_space<semaphore_mem>> -> memref<!tpu.dma_semaphore, #tpu.memory_space<semaphore_mem>>
    tpu.wait_dma2 semaphore(%41 : memref<!tpu.dma_semaphore, #tpu.memory_space<semaphore_mem>>) src(%37 : memref<128x128xbf16, #tpu.memory_space<any>>) dst(%39 : memref<128x128xbf16, #tpu.memory_space<vmem>>)
    %c1_i32_26 = arith.constant 1 : i32
    %42 = arith.addi %25, %c1_i32_26 : i32
    %c1_i32_27 = arith.constant 1 : i32
    %c0_i32_28 = arith.constant 0 : i32
    %43 = arith.cmpi eq, %c1_i32_27, %c0_i32_28 : i32
    %c1_i32_29 = arith.constant 1 : i32
    %44 = arith.select %43, %c1_i32_29, %c1_i32_27 : i32
    %45 = arith.remsi %42, %44 : i32
    %c0_i32_30 = arith.constant 0 : i32
    %46 = arith.cmpi ne, %45, %c0_i32_30 : i32
    %c0_i32_31 = arith.constant 0 : i32
    %47 = arith.cmpi slt, %45, %c0_i32_31 : i32
    %c0_i32_32 = arith.constant 0 : i32
    %48 = arith.cmpi slt, %44, %c0_i32_32 : i32
    %49 = arith.xori %47, %48 : i1
    %50 = arith.andi %49, %46 : i1
    %51 = arith.addi %45, %44 : i32
    %52 = arith.select %50, %51, %45 : i32
    %c1_i32_33 = arith.constant 1 : i32
    %53 = arith.subi %c1_i32_33, %35 : i32
    %c128_i32_34 = arith.constant 128 : i32
    %54 = arith.muli %52, %c128_i32_34 : i32
    %55 = tpu.assume_multiple %54, 128 : i32
    %c0_i32_35 = arith.constant 0 : i32
    %56 = tpu.memref_slice %arg1[%arg0, %55, %c0_i32_35] : memref<3x128x128xbf16, #tpu.memory_space<any>> -> memref<1x128x128xbf16, #tpu.memory_space<any>>
    %57 = tpu.memref_squeeze %56 : memref<1x128x128xbf16, #tpu.memory_space<any>> -> memref<128x128xbf16, #tpu.memory_space<any>>
    %c0_i32_36 = arith.constant 0 : i32
    %c0_i32_37 = arith.constant 0 : i32
    %58 = tpu.memref_slice %arg9[%53, %c0_i32_36, %c0_i32_37] : memref<2x128x128xbf16, #tpu.memory_space<vmem>> -> memref<1x128x128xbf16, #tpu.memory_space<vmem>>
    %59 = tpu.memref_squeeze %58 : memref<1x128x128xbf16, #tpu.memory_space<vmem>> -> memref<128x128xbf16, #tpu.memory_space<vmem>>
    %60 = tpu.memref_slice %arg10[%53] : memref<2x!tpu.dma_semaphore, #tpu.memory_space<semaphore_mem>> -> memref<1x!tpu.dma_semaphore, #tpu.memory_space<semaphore_mem>>
    %61 = tpu.memref_squeeze %60 : memref<1x!tpu.dma_semaphore, #tpu.memory_space<semaphore_mem>> -> memref<!tpu.dma_semaphore, #tpu.memory_space<semaphore_mem>>
    tpu.enqueue_dma source(%57 : memref<128x128xbf16, #tpu.memory_space<any>>) target(%59 : memref<128x128xbf16, #tpu.memory_space<vmem>>) target_semaphore(%61 : memref<!tpu.dma_semaphore, #tpu.memory_space<semaphore_mem>>)
    %c128_i32_38 = arith.constant 128 : i32
    %62 = arith.muli %25, %c128_i32_38 : i32
    %63 = tpu.assume_multiple %62, 128 : i32
    %c0_39 = arith.constant 0 : index
    %64 = arith.index_cast %63 : i32 to index
    %c0_40 = arith.constant 0 : index
    %65 = vector.load %arg2[%c0_39, %64, %c0_40] : memref<1x128x1xf32, #tpu.memory_space<vmem>>, vector<1x128x1xf32>
    %66 = vector.shape_cast %65 : vector<1x128x1xf32> to vector<128x1xf32>
    %67 = arith.index_cast %35 : i32 to index
    %c0_41 = arith.constant 0 : index
    %c0_42 = arith.constant 0 : index
    %68 = vector.load %arg9[%67, %c0_41, %c0_42] : memref<2x128x128xbf16, #tpu.memory_space<vmem>>, vector<1x128x128xbf16>
    %69 = vector.shape_cast %68 : vector<1x128x128xbf16> to vector<128x128xbf16>
    %c0_43 = arith.constant 0 : index
    %c0_44 = arith.constant 0 : index
    %70 = vector.load %arg11[%c0_43, %c0_44] : memref<128x128xbf16, #tpu.memory_space<vmem>>, vector<128x128xbf16>
    %cst_45 = arith.constant dense<0.000000e+00> : vector<128x128xf32>
    %71 = tpu.matmul %69, %70, %cst_45 {dimension_numbers = #tpu.dot_dimension_numbers<[1], [0], [0], [1], [0, 0, 1, 1], [], []>} : vector<128x128xbf16>, vector<128x128xbf16>, vector<128x128xf32> -> vector<128x128xf32>
    %72 = vector.broadcast %66 : vector<128x1xf32> to vector<128x128xf32>
    %73 = arith.mulf %72, %71 : vector<128x128xf32>
    %c0_46 = arith.constant 0 : index
    %c0_47 = arith.constant 0 : index
    %74 = vector.load %arg5[%c0_46, %c0_47] : memref<1x128xf32, #tpu.memory_space<vmem>>, vector<1x128xf32>
    %75 = vector.broadcast %74 : vector<1x128xf32> to vector<128x128xf32>
    %76 = arith.addf %73, %75 : vector<128x128xf32>
    %cst_48 = arith.constant 0.000000e+00 : f32
    %77 = vector.broadcast %cst_48 : f32 to vector<128x128xf32>
    %78 = arith.maximumf %76, %77 : vector<128x128xf32>
    %79 = arith.truncf %78 : vector<128x128xf32> to vector<128x128xbf16>
    %c0_49 = arith.constant 0 : index
    %c0_50 = arith.constant 0 : index
    %80 = vector.load %arg6[%c0_49, %c0_50] : memref<128x128xbf16, #tpu.memory_space<vmem>>, vector<128x128xbf16>
    %cst_51 = arith.constant dense<0.000000e+00> : vector<128x128xf32>
    %81 = tpu.matmul %79, %80, %cst_51 {dimension_numbers = #tpu.dot_dimension_numbers<[1], [0], [0], [1], [0, 0, 1, 1], [], []>} : vector<128x128xbf16>, vector<128x128xbf16>, vector<128x128xf32> -> vector<128x128xf32>
    %82 = vector.broadcast %66 : vector<128x1xf32> to vector<128x128xf32>
    %83 = arith.mulf %82, %81 : vector<128x128xf32>
    %84 = arith.truncf %83 : vector<128x128xf32> to vector<128x128xbf16>
    %85 = arith.index_cast %63 : i32 to index
    %c0_52 = arith.constant 0 : index
    %86 = vector.load %arg12[%85, %c0_52] : memref<128x128xbf16, #tpu.memory_space<vmem>>, vector<128x128xbf16>
    tpu.vector_store %arg12[%85, %c0_52], %84 {strides = array<i32>} : memref<128x128xbf16, #tpu.memory_space<vmem>>, vector<128x128xbf16>,
    %c1_i32_53 = arith.constant 1 : i32
    %c0_i32_54 = arith.constant 0 : i32
    %c1_i32_55 = arith.constant 1 : i32
    %87 = arith.muli %c0_i32_54, %c1_i32_55 : i32
    %c0_i32_56 = arith.constant 0 : i32
    %88 = arith.addi %c0_i32_56, %87 : i32
    %c1_i32_57 = arith.constant 1 : i32
    %89 = arith.addi %c1_i32_57, %88 : i32
    %c2_i32_58 = arith.constant 2 : i32
    %c0_i32_59 = arith.constant 0 : i32
    %90 = arith.cmpi eq, %c2_i32_58, %c0_i32_59 : i32
    %c1_i32_60 = arith.constant 1 : i32
    %91 = arith.select %90, %c1_i32_60, %c2_i32_58 : i32
    %92 = arith.remsi %89, %91 : i32
    %c0_i32_61 = arith.constant 0 : i32
    %93 = arith.cmpi ne, %92, %c0_i32_61 : i32
    %c0_i32_62 = arith.constant 0 : i32
    %94 = arith.cmpi slt, %92, %c0_i32_62 : i32
    %c0_i32_63 = arith.constant 0 : i32
    %95 = arith.cmpi slt, %91, %c0_i32_63 : i32
    %96 = arith.xori %94, %95 : i1
    %97 = arith.andi %96, %93 : i1
    %98 = arith.addi %92, %91 : i32
    %99 = arith.select %97, %98, %92 : i32
    %c0_i32_64 = arith.constant 0 : i32
    %c0_i32_65 = arith.constant 0 : i32
    %100 = tpu.memref_slice %arg1[%arg0, %c0_i32_64, %c0_i32_65] : memref<3x128x128xbf16, #tpu.memory_space<any>> -> memref<1x128x128xbf16, #tpu.memory_space<any>>
    %101 = tpu.memref_squeeze %100 : memref<1x128x128xbf16, #tpu.memory_space<any>> -> memref<128x128xbf16, #tpu.memory_space<any>>
    %c0_i32_66 = arith.constant 0 : i32
    %c0_i32_67 = arith.constant 0 : i32
    %102 = tpu.memref_slice %arg9[%99, %c0_i32_66, %c0_i32_67] : memref<2x128x128xbf16, #tpu.memory_space<vmem>> -> memref<1x128x128xbf16, #tpu.memory_space<vmem>>
    %103 = tpu.memref_squeeze %102 : memref<1x128x128xbf16, #tpu.memory_space<vmem>> -> memref<128x128xbf16, #tpu.memory_space<vmem>>
    %104 = tpu.memref_slice %arg10[%99] : memref<2x!tpu.dma_semaphore, #tpu.memory_space<semaphore_mem>> -> memref<1x!tpu.dma_semaphore, #tpu.memory_space<semaphore_mem>>
    %105 = tpu.memref_squeeze %104 : memref<1x!tpu.dma_semaphore, #tpu.memory_space<semaphore_mem>> -> memref<!tpu.dma_semaphore, #tpu.memory_space<semaphore_mem>>
    tpu.wait_dma2 semaphore(%105 : memref<!tpu.dma_semaphore, #tpu.memory_space<semaphore_mem>>) src(%101 : memref<128x128xbf16, #tpu.memory_space<any>>) dst(%103 : memref<128x128xbf16, #tpu.memory_space<vmem>>)
    %c1_i32_68 = arith.constant 1 : i32
    %106 = arith.addi %88, %c1_i32_68 : i32
    %c1_i32_69 = arith.constant 1 : i32
    %107 = arith.cmpi slt, %106, %c1_i32_69 : i32
    %108 = arith.extui %107 : i1 to i32
    %c0_i32_70 = arith.constant 0 : i32
    %109 = arith.cmpi ne, %108, %c0_i32_70 : i32
    scf.if %109 {
      %c1_i32_85 = arith.constant 1 : i32
      %131 = arith.addi %88, %c1_i32_85 : i32
      %c1_i32_86 = arith.constant 1 : i32
      %132 = arith.subi %c1_i32_86, %99 : i32
      %c128_i32_87 = arith.constant 128 : i32
      %133 = arith.muli %131, %c128_i32_87 : i32
      %134 = tpu.assume_multiple %133, 128 : i32
      %c0_i32_88 = arith.constant 0 : i32
      %135 = tpu.memref_slice %arg1[%arg0, %134, %c0_i32_88] : memref<3x128x128xbf16, #tpu.memory_space<any>> -> memref<1x128x128xbf16, #tpu.memory_space<any>>
      %136 = tpu.memref_squeeze %135 : memref<1x128x128xbf16, #tpu.memory_space<any>> -> memref<128x128xbf16, #tpu.memory_space<any>>
      %c0_i32_89 = arith.constant 0 : i32
      %c0_i32_90 = arith.constant 0 : i32
      %137 = tpu.memref_slice %arg9[%132, %c0_i32_89, %c0_i32_90] : memref<2x128x128xbf16, #tpu.memory_space<vmem>> -> memref<1x128x128xbf16, #tpu.memory_space<vmem>>
      %138 = tpu.memref_squeeze %137 : memref<1x128x128xbf16, #tpu.memory_space<vmem>> -> memref<128x128xbf16, #tpu.memory_space<vmem>>
      %139 = tpu.memref_slice %arg10[%132] : memref<2x!tpu.dma_semaphore, #tpu.memory_space<semaphore_mem>> -> memref<1x!tpu.dma_semaphore, #tpu.memory_space<semaphore_mem>>
      %140 = tpu.memref_squeeze %139 : memref<1x!tpu.dma_semaphore, #tpu.memory_space<semaphore_mem>> -> memref<!tpu.dma_semaphore, #tpu.memory_space<semaphore_mem>>
      tpu.enqueue_dma source(%136 : memref<128x128xbf16, #tpu.memory_space<any>>) target(%138 : memref<128x128xbf16, #tpu.memory_space<vmem>>) target_semaphore(%140 : memref<!tpu.dma_semaphore, #tpu.memory_space<semaphore_mem>>)
    } else {
    }
    %c128_i32_71 = arith.constant 128 : i32
    %110 = arith.muli %88, %c128_i32_71 : i32
    %111 = tpu.assume_multiple %110, 128 : i32
    %c0_72 = arith.constant 0 : index
    %112 = arith.index_cast %111 : i32 to index
    %c0_73 = arith.constant 0 : index
    %113 = vector.load %arg2[%c0_72, %112, %c0_73] : memref<1x128x1xf32, #tpu.memory_space<vmem>>, vector<1x128x1xf32>
    %114 = vector.shape_cast %113 : vector<1x128x1xf32> to vector<128x1xf32>
    %115 = arith.index_cast %99 : i32 to index
    %c0_74 = arith.constant 0 : index
    %c0_75 = arith.constant 0 : index
    %116 = vector.load %arg9[%115, %c0_74, %c0_75] : memref<2x128x128xbf16, #tpu.memory_space<vmem>>, vector<1x128x128xbf16>
    %117 = vector.shape_cast %116 : vector<1x128x128xbf16> to vector<128x128xbf16>
    %c0_76 = arith.constant 0 : index
    %c0_77 = arith.constant 0 : index
    %118 = vector.load %arg12[%c0_76, %c0_77] : memref<128x128xbf16, #tpu.memory_space<vmem>>, vector<128x128xbf16>
    %cst_78 = arith.constant dense<0.000000e+00> : vector<128x128xf32>
    %119 = tpu.matmul %117, %118, %cst_78 {dimension_numbers = #tpu.dot_dimension_numbers<[1], [0], [0], [1], [0, 0, 1, 1], [], []>} : vector<128x128xbf16>, vector<128x128xbf16>, vector<128x128xf32> -> vector<128x128xf32>
    %120 = vector.broadcast %114 : vector<128x1xf32> to vector<128x128xf32>
    %121 = arith.mulf %120, %119 : vector<128x128xf32>
    %c0_79 = arith.constant 0 : index
    %c0_80 = arith.constant 0 : index
    %122 = vector.load %arg7[%c0_79, %c0_80] : memref<1x128xf32, #tpu.memory_space<vmem>>, vector<1x128xf32>
    %123 = vector.broadcast %122 : vector<1x128xf32> to vector<128x128xf32>
    %124 = arith.addf %121, %123 : vector<128x128xf32>
    %cst_81 = arith.constant 0.000000e+00 : f32
    %125 = vector.broadcast %cst_81 : f32 to vector<128x128xf32>
    %126 = arith.maximumf %124, %125 : vector<128x128xf32>
    %c0_82 = arith.constant 0 : index
    %127 = arith.index_cast %111 : i32 to index
    %c0_83 = arith.constant 0 : index
    %128 = vector.load %arg8[%c0_82, %127, %c0_83] : memref<1x128x128xf32, #tpu.memory_space<vmem>>, vector<1x128x128xf32>
    %129 = vector.shape_cast %128 : vector<1x128x128xf32> to vector<128x128xf32>
    %130 = vector.shape_cast %126 : vector<128x128xf32> to vector<1x128x128xf32>
    tpu.vector_store %arg8[%c0_82, %127, %c0_83], %130 {strides = array<i32>} : memref<1x128x128xf32, #tpu.memory_space<vmem>>, vector<1x128x128xf32>,
    %c1_i32_84 = arith.constant 1 : i32
    return
  }
  func.func @transform_1(%arg0: i32) -> (i32, i32, i32) {
    %c0_i32 = arith.constant 0 : i32
    %c0_i32_0 = arith.constant 0 : i32
    %c0_i32_1 = arith.constant 0 : i32
    return %arg0, %c0_i32, %c0_i32_0 : i32, i32, i32
  }
  func.func @transform_2(%arg0: i32) -> (i32, i32, i32) {
    %c0_i32 = arith.constant 0 : i32
    %c0_i32_0 = arith.constant 0 : i32
    %c0_i32_1 = arith.constant 0 : i32
    return %arg0, %c0_i32, %c0_i32_0 : i32, i32, i32
  }
  func.func @transform_3(%arg0: i32) -> (i32, i32) {
    %c0_i32 = arith.constant 0 : i32
    %c0_i32_0 = arith.constant 0 : i32
    %c0_i32_1 = arith.constant 0 : i32
    return %c0_i32, %c0_i32_0 : i32, i32
  }
  func.func @transform_4(%arg0: i32) -> (i32, i32) {
    %c0_i32 = arith.constant 0 : i32
    %c0_i32_0 = arith.constant 0 : i32
    %c0_i32_1 = arith.constant 0 : i32
    return %c0_i32, %c0_i32_0 : i32, i32
  }
  func.func @transform_5(%arg0: i32) -> (i32, i32) {
    %c0_i32 = arith.constant 0 : i32
    %c0_i32_0 = arith.constant 0 : i32
    %c0_i32_1 = arith.constant 0 : i32
    return %c0_i32, %c0_i32_0 : i32, i32
  }
  func.func @transform_6(%arg0: i32) -> (i32, i32) {
    %c0_i32 = arith.constant 0 : i32
    %c0_i32_0 = arith.constant 0 : i32
    %c0_i32_1 = arith.constant 0 : i32
    return %c0_i32, %c0_i32_0 : i32, i32
  }
  func.func @transform_7(%arg0: i32) -> (i32, i32, i32) {
    %c0_i32 = arith.constant 0 : i32
    %c0_i32_0 = arith.constant 0 : i32
    %c0_i32_1 = arith.constant 0 : i32
    return %arg0, %c0_i32, %c0_i32_0 : i32, i32, i32
  }
}

</mosaic_0001>

<bundles_post_ra>
// kernel: _forward_impl.1
= control target key start
LH: loop header
LB: loop body
LE: loop exit
PB: predicated region body
PF: predicated region fallthrough
CT: control target
= control target key end

     0   :  { %s1926_s24 = smov 0   ;;  %s2261_s0 = inlined_call_operand.vmem [shape: bf16[3,128,128], index: 0, kind: input, shape index: {}]   ;;  %s2262_s1 = inlined_call_operand.vmem [shape: f32[3,128,1], index: 1, kind: input, shape index: {}]   ;;  %s2263_s2 = inlined_call_operand.vmem [shape: bf16[3,128,128], index: 2, kind: input, shape index: {}]   ;;  %s2264_s3 = inlined_call_operand.vmem [shape: bf16[128,128], index: 3, kind: input, shape index: {}]   ;;  %s2265_s4 = inlined_call_operand.vmem [shape: f32[1,128], index: 4, kind: input, shape index: {}]   ;;  %s2266_s5 = inlined_call_operand.vmem [shape: bf16[128,128], index: 5, kind: input, shape index: {}]   ;;  %s2267_s6 = inlined_call_operand.vmem [shape: f32[1,128], index: 6, kind: input, shape index: {}]   ;;  %s2268_s7 = inlined_call_operand.vmem [shape: f32[3,128,128], index: 7, kind: output, shape index: {}]  }
   0x1 LB: > { %s1595_s25 = sadd.s32 4294967295, %s1883_s24   ;;  %p1599_p0 = scmp.ge.s32.totalorder %s1883_s24, 1  ;;  %s1883_s24 = sphi %s1926_s24, %s17_s24  }
   0x2   : > { %p223_p1 = scmp.lt.s32.totalorder %s1883_s24, 4 }
   0x4   : > { %p224_p2 = pnand %p1599_p0, %p223_p1 }
   0x5   : > { %p258_p3 = scmp.lt.s32.totalorder (!%p224_p2), %s1595_s25, 2  ;;  %s1641_s26 = sshll.u32 (!%p224_p2), %s1595_s25, 6 }
   0x6   : > { %227 = sbr.rel (%p224_p2) target bundleno = 1073 (0x431), region = 44  ;;  %s1937_s29 = scalar_lea.vmem (!%p224_p2), %s2261_s0, %s1641_s26 }
   0x7   : > { %v1940_v0 = vld [vmem:[%s1937_s29] sm:$0xff] (!%p224_p2)  ;;  %v1943_v1 = vld [vmem:[%s1937_s29 + $0x8] sm:$0xff] (!%p224_p2)  ;;  %v1946_v2 = vld [vmem:[%s1937_s29 + $0x10] sm:$0xff] (!%p224_p2) }
   0x8   : > { %v1949_v3 = vld [vmem:[%s1937_s29 + $0x18] sm:$0xff] (!%p224_p2)  ;;  %v1952_v4 = vld [vmem:[%s1937_s29 + $0x20] sm:$0xff] (!%p224_p2)  ;;  %v1955_v5 = vld [vmem:[%s1937_s29 + $0x28] sm:$0xff] (!%p224_p2) }
   0x9   : > { %v1958_v6 = vld [vmem:[%s1937_s29 + $0x30] sm:$0xff] (!%p224_p2)  ;;  %v1961_v7 = vld [vmem:[%s1937_s29 + $0x38] sm:$0xff] (!%p224_p2) }
   0xd   : > { %s2270_s25 = smov (!%p258_p3, %s1595_s25), 2 }
   0xe   : > { %s1638_s30 = sshll.u32 %s2270_s25, 7  ;;  %s1639_s8 = sshll.u32 %s2270_s25, 6 }
   0xf   : > { %s1966_s11 = scalar_lea.vmem %s2262_s1, %s1638_s30  ;;  %s1971_s14 = scalar_lea.vmem %s2263_s2, %s1639_s8 }
  0x10   : > { %s1976_s17 = scalar_lea.vmem %s2268_s7, %s1638_s30 }
  0x11   : > { %333 = vsyncadd [#allocation3], 1024  ;;  %v1845_v8 = vld [vmem:[%s2264_s3] sm:$0xff]   ;;  %v1846_v9 = vld [vmem:[%s2264_s3 + $0x8] sm:$0xff]   ;;  %v1885_v10 = vmov 0  }
  0x12   : > { %1844 = vset.pattern.permute.xlu1 %v1885_v10  ;;  %1843 = vset.pattern.permute.xlu0 %v1885_v10  ;;  %v1847_v11 = vld [vmem:[%s2264_s3 + $0x10] sm:$0xff]   ;;  %v1848_v12 = vld [vmem:[%s2264_s3 + $0x18] sm:$0xff]   ;;  %v1853_v13 = vld [vmem:[%s1971_s14] sm:$0xff]  }
  0x13   : > { %1706 = vmatprep.subr.bf16.mxu0 %v1845_v8  ;;  %1722 = vmatprep.mubr.bf16.mxu0 %v1853_v13  ;;  %v1849_v14 = vld [vmem:[%s2264_s3 + $0x20] sm:$0xff]   ;;  %v561_v15 = vld [vmem:[%s1966_s11 + $0x10] sm:$0xff]  ;;  %v1850_v17 = vld [vmem:[%s2264_s3 + $0x28] sm:$0xff]  }
  0x14   : > { %1707 = vmatpush3.bf16.msra.mxu0 %v1845_v8  ;;  %v559_v16 = vld [vmem:[%s1966_s11] sm:$0xff]  ;;  %587 = vperm.xlu1 %1844, %v561_v15   ;;  %v562_v18 = vld [vmem:[%s1966_s11 + $0x18] sm:$0xff]  ;;  %v560_v19 = vld [vmem:[%s1966_s11 + $0x8] sm:$0xff] }
  0x15   : > { %1708 = vmatprep.subr.bf16.mxu0 %v1846_v9  ;;  %577 = vperm.xlu0 %1843, %v559_v16   ;;  %v1851_v20 = vld [vmem:[%s2264_s3 + $0x30] sm:$0xff]   ;;  %v564_v21 = vld [vmem:[%s1966_s11 + $0x28] sm:$0xff]  ;;  %v563_v22 = vld [vmem:[%s1966_s11 + $0x20] sm:$0xff] }
  0x16   : > { %v1852_v23 = vld [vmem:[%s2264_s3 + $0x38] sm:$0xff]   ;;  %v565_v25 = vld [vmem:[%s1966_s11 + $0x30] sm:$0xff]  ;;  %v568_v26 = vld [vmem:[%s1966_s11 + $0x48] sm:$0xff] }
  0x17   : > { %v566_v24 = vld [vmem:[%s1966_s11 + $0x38] sm:$0xff]  ;;  %v1854_v27 = vld [vmem:[%s1971_s14 + $0x8] sm:$0xff]   ;;  %v567_v28 = vld [vmem:[%s1966_s11 + $0x40] sm:$0xff] }
  0x18   : > { %1709 = vmatpush3.bf16.msra.mxu0 %v1846_v9  ;;  %592 = vperm.xlu1 %1844, %v562_v18   ;;  %v1855_v29 = vld [vmem:[%s1971_s14 + $0x10] sm:$0xff]   ;;  %v570_v30 = vld [vmem:[%s1966_s11 + $0x58] sm:$0xff]  ;;  %v572_v32 = vld [vmem:[%s1966_s11 + $0x68] sm:$0xff] }
  0x19   : > { %1710 = vmatprep.subr.bf16.mxu0 %v1847_v11  ;;  %582 = vperm.xlu0 %1843, %v560_v19   ;;  %v569_v31 = vld [vmem:[%s1966_s11 + $0x50] sm:$0xff]  ;;  %v1856_v33 = vld [vmem:[%s1971_s14 + $0x18] sm:$0xff]   ;;  %v571_v34 = vld [vmem:[%s1966_s11 + $0x60] sm:$0xff] }
  0x1a   : > { %v1857_v35 = vld [vmem:[%s1971_s14 + $0x20] sm:$0xff]   ;;  %v574_v36 = vld [vmem:[%s1966_s11 + $0x78] sm:$0xff]  ;;  %v573_v37 = vld [vmem:[%s1966_s11 + $0x70] sm:$0xff] }
  0x1b   : > { %v1858_v38 = vld [vmem:[%s1971_s14 + $0x28] sm:$0xff]   ;;  %v1859_v39 = vld [vmem:[%s1971_s14 + $0x30] sm:$0xff]   ;;  %v1860_v40 = vld [vmem:[%s1971_s14 + $0x38] sm:$0xff]  }
  0x1c   : > { %1711 = vmatpush3.bf16.msra.mxu0 %v1847_v11  ;;  %602 = vperm.xlu1 %1844, %v564_v21  }
  0x1d   : > { %1712 = vmatprep.subr.bf16.mxu0 %v1848_v12  ;;  %597 = vperm.xlu0 %1843, %v563_v22  }
  0x20   : > { %1713 = vmatpush3.bf16.msra.mxu0 %v1848_v12  ;;  %612 = vperm.xlu1 %1844, %v566_v24  }
  0x21   : > { %1714 = vmatprep.subr.bf16.mxu0 %v1849_v14  ;;  %607 = vperm.xlu0 %1843, %v565_v25  }
  0x24   : > { %1715 = vmatpush3.bf16.msra.mxu0 %v1849_v14  ;;  %622 = vperm.xlu1 %1844, %v568_v26  }
  0x25   : > { %1716 = vmatprep.subr.bf16.mxu0 %v1850_v17  ;;  %617 = vperm.xlu0 %1843, %v567_v28  }
  0x28   : > { %1717 = vmatpush3.bf16.msra.mxu0 %v1850_v17  ;;  %632 = vperm.xlu1 %1844, %v570_v30  }
  0x29   : > { %1718 = vmatprep.subr.bf16.mxu0 %v1851_v20  ;;  %627 = vperm.xlu0 %1843, %v569_v31  }
  0x2c   : > { %1719 = vmatpush3.bf16.msra.mxu0 %v1851_v20  ;;  %642 = vperm.xlu1 %1844, %v572_v32  }
  0x2d   : > { %1720 = vmatprep.subr.bf16.mxu0 %v1852_v23  ;;  %637 = vperm.xlu0 %1843, %v571_v34  }
  0x30   : > { %1721 = vmatpush3.bf16.msra.mxu0 %v1852_v23  ;;  %652 = vperm.xlu1 %1844, %v574_v36  }
  0x31   : > { %647 = vperm.xlu0 %1843, %v573_v37  }
  0x33   : > { %1723 = vmatmul.mubr.bf16.vlgmr.msra.gmra.mrb[0].mxu0 %v1854_v27 }
  0x34   : > { %1726 = vmatprep.mubr.bf16.mxu0 %v1855_v29 }
  0x3b   : > { %1727 = vmatmul.mubr.bf16.gmra.mrb[4].mxu0 %v1856_v33 }
  0x3c   : > { %1730 = vmatprep.mubr.bf16.mxu0 %v1857_v35 }
  0x43   : > { %1731 = vmatmul.mubr.bf16.gmra.mrb[8].mxu0 %v1858_v38 }
  0x44   : > { %1734 = vmatprep.mubr.bf16.mxu0 %v1859_v39 }
  0x4b   : > { %1735 = vmatmul.mubr.bf16.gmra.mrb[12].mxu0 %v1860_v40 }
  0x93   : > { %v588_v41 = vpop.permute.xlu1 %587 }
  0x94   : > { %v578_v42 = vpop.permute.xlu0 %577 }
  0x97   : > { %v593_v43 = vpop.permute.xlu1 %592 }
  0x98   : > { %v583_v44 = vpop.permute.xlu0 %582 }
  0x9b   : > { %v603_v45 = vpop.permute.xlu1 %602 }
  0x9c   : > { %v598_v46 = vpop.permute.xlu0 %597 }
  0x9f   : > { %v613_v48 = vpop.permute.xlu1 %612 }
  0xa0   : > { %v608_v50 = vpop.permute.xlu0 %607 }
  0xa3   : > { %v623_v59 = vpop.permute.xlu1 %622 }
  0xa4   : > { %v618_v60 = vpop.permute.xlu0 %617 }
  0xa7   : > { %v633_v14 = vpop.permute.xlu1 %632 }
  0xa8   : > { %v628_v16 = vpop.permute.xlu0 %627 }
  0xab   : > { %v643_v21 = vpop.permute.xlu1 %642 }
  0xac   : > { %v638_v25 = vpop.permute.xlu0 %637 }
  0xaf   : > { %v653_v31 = vpop.permute.xlu1 %652 }
  0xb0   : > { %v648_v33 = vpop.permute.xlu0 %647 }
 0x106   : > { %v1724_v47 = vpop.f32.mrb[0].mxu0 }
 0x107   : > { %v496_v49 = vpop.f32.mrb[1].mxu0  ;;  %v657_v52 = vmul.f32 %v1724_v47, %v588_v41 }
 0x108   : > { %v1725_v51 = vpop.f32.mrb[2].mxu0  ;;  %v655_v55 = vmul.f32 %v578_v42, %v496_v49 }
 0x109   : > { %v658_v53 = vmul.f32 %v1725_v51, %v593_v43  ;;  %v499_v54 = vpop.f32.mrb[3].mxu0 }
 0x10a   : > { %v656_v56 = vmul.f32 %v583_v44, %v499_v54 }
 0x10b   : > { %v672_v57 = vpack.c.bf16 %v658_v53, %v657_v52 }
 0x10c   : > { %v671_v58 = vpack.c.bf16 %v656_v56, %v655_v55 }
 0x10e   : > { %v1728_v61 = vpop.f32.mrb[4].mxu0 }
 0x10f   : > { %v512_v62 = vpop.f32.mrb[5].mxu0  ;;  %v661_v8 = vmul.f32 %v1728_v61, %v608_v50 }
 0x110   : > { %v1729_v63 = vpop.f32.mrb[6].mxu0  ;;  %v659_v12 = vmul.f32 %v598_v46, %v512_v62 }
 0x111   : > { %v662_v9 = vmul.f32 %v1729_v63, %v613_v48  ;;  %v515_v11 = vpop.f32.mrb[7].mxu0 }
 0x112   : > { %v660_v13 = vmul.f32 %v603_v45, %v515_v11 }
 0x113   : > { %v2028_v15 = vpack.c.bf16 %v662_v9, %v661_v8 }
 0x114   : > { %v673_v17 = vpack.c.bf16 %v660_v13, %v659_v12 }
 0x116   : > { %v1732_v18 = vpop.f32.mrb[8].mxu0 }
 0x117   : > { %v528_v19 = vpop.f32.mrb[9].mxu0  ;;  %v665_v22 = vmul.f32 %v1732_v18, %v628_v16 }
 0x118   : > { %v1733_v20 = vpop.f32.mrb[10].mxu0  ;;  %v663_v26 = vmul.f32 %v618_v60, %v528_v19 }
 0x119   : > { %v666_v23 = vmul.f32 %v1733_v20, %v633_v14  ;;  %v531_v24 = vpop.f32.mrb[11].mxu0 }
 0x11a   : > { %v664_v27 = vmul.f32 %v623_v59, %v531_v24 }
 0x11b   : > { %v2030_v28 = vpack.c.bf16 %v666_v23, %v665_v22 }
 0x11c   : > { %v675_v29 = vpack.c.bf16 %v664_v27, %v663_v26 }
 0x11e   : > { %v1736_v30 = vpop.f32.mrb[12].mxu0 }
 0x11f   : > { %v544_v32 = vpop.f32.mrb[13].mxu0  ;;  %v669_v35 = vmul.f32 %v1736_v30, %v648_v33 }
 0x120   : > { %v1737_v34 = vpop.f32.mrb[14].mxu0  ;;  %v667_v38 = vmul.f32 %v638_v25, %v544_v32 }
 0x121   : > { %v670_v36 = vmul.f32 %v1737_v34, %v653_v31  ;;  %v547_v37 = vpop.f32.mrb[15].mxu0 }
 0x122   : > { %v668_v39 = vmul.f32 %v643_v21, %v547_v37 }
 0x123   : > { %v2032_v40 = vpack.c.bf16 %v670_v36, %v669_v35 }
 0x124   : > { %v2034_v41 = vpack.c.bf16 %v668_v39, %v667_v38 }
 0x125   : > { %1877 = dma.done.wait [#allocation3], 1024 }
 0x126   : > { %1878 = vsyncadd [#allocation3], 4294966272  ;;  %v2037_v42 = vld [vmem:[%s1937_s29] sm:$0xff]  ;;  %v2040_v43 = vld [vmem:[%s1937_s29 + $0x8] sm:$0xff] }
 0x127   : > { %v2043_v44 = vld [vmem:[%s1937_s29 + $0x10] sm:$0xff]  ;;  %v2046_v45 = vld [vmem:[%s1937_s29 + $0x18] sm:$0xff]  ;;  %v2049_v46 = vld [vmem:[%s1937_s29 + $0x20] sm:$0xff] }
 0x128   : > { %v2052_v47 = vld [vmem:[%s1937_s29 + $0x28] sm:$0xff]  ;;  %v2055_v48 = vld [vmem:[%s1937_s29 + $0x30] sm:$0xff]  ;;  %v2058_v49 = vld [vmem:[%s1937_s29 + $0x38] sm:$0xff] }
 0x129   : > { %748 = vsyncadd [#allocation3 + $0x1], 1024  ;;  %1738 = vmatprep.subr.bf16.mxu1 %v671_v58  ;;  %1754 = vmatprep.mubr.bf16.mxu1 %v1940_v0  ;;  %v749_v50 = vld [vmem:[%s1966_s11] sm:$0xff]  ;;  %v751_v51 = vld [vmem:[%s1966_s11 + $0x10] sm:$0xff] }
 0x12a   : > { %1739 = vmatpush3.bf16.msra.mxu1 %v671_v58  ;;  %1861 = vset.pattern.permute.xlu0 %v1885_v10  ;;  %v750_v52 = vld [vmem:[%s1966_s11 + $0x8] sm:$0xff]  ;;  %v752_v53 = vld [vmem:[%s1966_s11 + $0x18] sm:$0xff]  ;;  %v753_v54 = vld [vmem:[%s1966_s11 + $0x20] sm:$0xff] }
 0x12b   : > { %1740 = vmatprep.subr.bf16.mxu1 %v672_v57  ;;  %1862 = vset.pattern.permute.xlu1 %v1885_v10  ;;  %v754_v55 = vld [vmem:[%s1966_s11 + $0x28] sm:$0xff]  ;;  %v1863_v0 = vld [vmem:[%s2266_s5] sm:$0xff]   ;;  %v755_v56 = vld [vmem:[%s1966_s11 + $0x30] sm:$0xff] }
 0x12c   : > { %880 = vperm.xlu0 %1861, %v749_v50   ;;  %890 = vperm.xlu1 %1862, %v751_v51   ;;  %v756_v58 = vld [vmem:[%s1966_s11 + $0x38] sm:$0xff]  ;;  %v757_v59 = vld [vmem:[%s1966_s11 + $0x40] sm:$0xff]  ;;  %v758_v60 = vld [vmem:[%s1966_s11 + $0x48] sm:$0xff] }
 0x12d   : > { %1770 = vmatprep.subr.bf16.mxu0 %v1863_v0  ;;  %v1865_v61 = vld [vmem:[%s2266_s5 + $0x10] sm:$0xff]   ;;  %v760_v63 = vld [vmem:[%s1966_s11 + $0x58] sm:$0xff]  ;;  %v761_v9 = vld [vmem:[%s1966_s11 + $0x60] sm:$0xff] }
 0x12e   : > { %1741 = vmatpush3.bf16.msra.mxu1 %v672_v57  ;;  %1771 = vmatpush3.bf16.msra.mxu0 %v1863_v0  ;;  %v1864_v57 = vld [vmem:[%s2266_s5 + $0x8] sm:$0xff]   ;;  %v759_v62 = vld [vmem:[%s1966_s11 + $0x50] sm:$0xff]  ;;  %v1866_v8 = vld [vmem:[%s2266_s5 + $0x18] sm:$0xff]  }
 0x12f   : > { %1742 = vmatprep.subr.bf16.mxu1 %v673_v17  ;;  %1772 = vmatprep.subr.bf16.mxu0 %v1864_v57  ;;  %v762_v11 = vld [vmem:[%s1966_s11 + $0x68] sm:$0xff]  ;;  %v1867_v12 = vld [vmem:[%s2266_s5 + $0x20] sm:$0xff]   ;;  %v763_v13 = vld [vmem:[%s1966_s11 + $0x70] sm:$0xff] }
 0x130   : > { %885 = vperm.xlu0 %1861, %v750_v52   ;;  %895 = vperm.xlu1 %1862, %v752_v53   ;;  %v764_v14 = vld [vmem:[%s1966_s11 + $0x78] sm:$0xff]  ;;  %v2135_v19 = vld [vmem:[%s2265_s4] ss:$0 sm:$0xff] }
 0x132   : > { %1743 = vmatpush3.bf16.msra.mxu1 %v673_v17  ;;  %1773 = vmatpush3.bf16.msra.mxu0 %v1864_v57 }
 0x133   : > { %1744 = vmatprep.subr.bf16.mxu1 %v2028_v15  ;;  %1774 = vmatprep.subr.bf16.mxu0 %v1865_v61 }
 0x134   : > { %900 = vperm.xlu0 %1861, %v753_v54   ;;  %905 = vperm.xlu1 %1862, %v754_v55  }
 0x136   : > { %1745 = vmatpush3.bf16.msra.mxu1 %v2028_v15  ;;  %1775 = vmatpush3.bf16.msra.mxu0 %v1865_v61  ;;  %v1868_v15 = vld [vmem:[%s2266_s5 + $0x28] sm:$0xff]  }
 0x137   : > { %1746 = vmatprep.subr.bf16.mxu1 %v675_v29  ;;  %1776 = vmatprep.subr.bf16.mxu0 %v1866_v8 }
 0x138   : > { %910 = vperm.xlu0 %1861, %v755_v56   ;;  %915 = vperm.xlu1 %1862, %v756_v58  }
 0x13a   : > { %1747 = vmatpush3.bf16.msra.mxu1 %v675_v29  ;;  %1777 = vmatpush3.bf16.msra.mxu0 %v1866_v8 }
 0x13b   : > { %1748 = vmatprep.subr.bf16.mxu1 %v2030_v28  ;;  %1778 = vmatprep.subr.bf16.mxu0 %v1867_v12 }
 0x13c   : > { %920 = vperm.xlu0 %1861, %v757_v59   ;;  %925 = vperm.xlu1 %1862, %v758_v60  }
 0x13e   : > { %1749 = vmatpush3.bf16.msra.mxu1 %v2030_v28  ;;  %1779 = vmatpush3.bf16.msra.mxu0 %v1867_v12 }
 0x13f   : > { %1750 = vmatprep.subr.bf16.mxu1 %v2034_v41  ;;  %1780 = vmatprep.subr.bf16.mxu0 %v1868_v15 }
 0x140   : > { %930 = vperm.xlu0 %1861, %v759_v62   ;;  %935 = vperm.xlu1 %1862, %v760_v63  }
 0x142   : > { %1751 = vmatpush3.bf16.msra.mxu1 %v2034_v41  ;;  %1781 = vmatpush3.bf16.msra.mxu0 %v1868_v15 }
 0x143   : > { %1752 = vmatprep.subr.bf16.mxu1 %v2032_v40 }
 0x144   : > { %940 = vperm.xlu0 %1861, %v761_v9   ;;  %945 = vperm.xlu1 %1862, %v762_v11  }
 0x146   : > { %1753 = vmatpush3.bf16.msra.mxu1 %v2032_v40 }
 0x148   : > { %950 = vperm.xlu0 %1861, %v763_v13   ;;  %955 = vperm.xlu1 %1862, %v764_v14  }
 0x149   : > { %1755 = vmatmul.mubr.bf16.vlgmr.msra.gmra.mrb[0].mxu1 %v1943_v1  ;;  %v1869_v1 = vld [vmem:[%s2266_s5 + $0x30] sm:$0xff]  }
 0x14a   : > { %1758 = vmatprep.mubr.bf16.mxu1 %v1946_v2  ;;  %1782 = vmatprep.subr.bf16.mxu0 %v1869_v1  ;;  %v1870_v2 = vld [vmem:[%s2266_s5 + $0x38] sm:$0xff]  }
 0x14b   : > { %1783 = vmatpush3.bf16.msra.mxu0 %v1869_v1 }
 0x14c   : > { %1784 = vmatprep.subr.bf16.mxu0 %v1870_v2 }
 0x14f   : > { %1785 = vmatpush3.bf16.msra.mxu0 %v1870_v2 }
 0x151   : > { %1759 = vmatmul.mubr.bf16.gmra.mrb[4].mxu1 %v1949_v3 }
 0x152   : > { %1762 = vmatprep.mubr.bf16.mxu1 %v1952_v4 }
 0x159   : > { %1763 = vmatmul.mubr.bf16.gmra.mrb[8].mxu1 %v1955_v5 }
 0x15a   : > { %1766 = vmatprep.mubr.bf16.mxu1 %v1958_v6 }
 0x161   : > { %1767 = vmatmul.mubr.bf16.gmra.mrb[12].mxu1 %v1961_v7 }
 0x162   : > { %1818 = vmatprep.mubr.bf16.mxu1 %v2037_v42 }
 0x1ab   : > { %v2118_v3 = vpop.permute.xlu0 %880  ;;  %v2120_v4 = vpop.permute.xlu1 %890 }
 0x1af   : > { %v2122_v5 = vpop.permute.xlu0 %885  ;;  %v2124_v6 = vpop.permute.xlu1 %895 }
 0x1b3   : > { %v2126_v7 = vpop.permute.xlu0 %900  ;;  %v2128_v16 = vpop.permute.xlu1 %905 }
 0x1b7   : > { %v2130_v17 = vpop.permute.xlu0 %910  ;;  %v2138_v22 = vpop.permute.xlu1 %915 }
 0x1bb   : > { %v2146_v31 = vpop.permute.xlu0 %920  ;;  %v2149_v35 = vpop.permute.xlu1 %925 }
 0x1bf   : > { %v2155_v0 = vpop.permute.xlu0 %930  ;;  %v2160_v59 = vpop.permute.xlu1 %935 }
 0x1c3   : > { %v2164_v14 = vpop.permute.xlu0 %940 }
 0x21c   : > { %v1756_v18 = vpop.f32.mrb[0].mxu1 }
 0x21d   : > { %v960_v20 = vmul.f32 %v1756_v18, %v2120_v4  ;;  %v815_v21 = vpop.f32.mrb[1].mxu1 }
 0x21e   : > { %v958_v23 = vmul.f32 %v2118_v3, %v815_v21  ;;  %v1757_v24 = vpop.f32.mrb[2].mxu1 }
 0x21f   : > { %v983_v25 = vadd.f32 %v2135_v19, %v960_v20  ;;  %v961_v26 = vmul.f32 %v1757_v24, %v2124_v6  ;;  %v818_v27 = vpop.f32.mrb[3].mxu1 }
 0x220   : > { %v959_v28 = vmul.f32 %v2122_v5, %v818_v27  ;;  %v981_v29 = vadd.f32 %v2135_v19, %v958_v23  ;;  %v2169_v23 = vpop.permute.xlu1 %945 }
 0x221   : > { %v984_v30 = vadd.f32 %v2135_v19, %v961_v26  ;;  %v999_v33 = vmax.f32 %v983_v25, 0.0 }
 0x222   : > { %v982_v32 = vadd.f32 %v2135_v19, %v959_v28  ;;  %v997_v37 = vmax.f32 %v981_v29, 0.0 }
 0x223   : > { %v1000_v34 = vmax.f32 %v984_v30, 0.0  ;;  %v951_v30 = vpop.permute.xlu0 %950 }
 0x224   : > { %v1760_v36 = vpop.f32.mrb[4].mxu1  ;;  %v998_v38 = vmax.f32 %v982_v32, 0.0 }
 0x225   : > { %v964_v39 = vmul.f32 %v1760_v36, %v2130_v17  ;;  %v831_v40 = vpop.f32.mrb[5].mxu1  ;;  %v1014_v41 = vpack.c.bf16 %v1000_v34, %v999_v33 }
 0x226   : > { %v962_v50 = vmul.f32 %v2126_v7, %v831_v40  ;;  %v1761_v51 = vpop.f32.mrb[6].mxu1  ;;  %v1013_v52 = vpack.c.bf16 %v998_v38, %v997_v37 }
 0x227   : > { %v987_v53 = vadd.f32 %v2135_v19, %v964_v39  ;;  %v965_v54 = vmul.f32 %v1761_v51, %v2138_v22  ;;  %v834_v55 = vpop.f32.mrb[7].mxu1  ;;  %v956_v39 = vpop.permute.xlu1 %955 }
 0x228   : > { %v985_v56 = vadd.f32 %v2135_v19, %v962_v50  ;;  %v963_v58 = vmul.f32 %v2128_v16, %v834_v55  ;;  %1786 = vmatprep.mubr.bf16.mxu0 %v1013_v52 }
 0x229   : > { %v988_v57 = vadd.f32 %v2135_v19, %v965_v54  ;;  %1787 = vmatmul.mubr.bf16.vlgmr.msra.gmra.mrb[16].mxu0 %v1014_v41  ;;  %v1003_v61 = vmax.f32 %v987_v53, 0.0 }
 0x22a   : > { %v986_v60 = vadd.f32 %v2135_v19, %v963_v58  ;;  %v1001_v63 = vmax.f32 %v985_v56, 0.0 }
 0x22b   : > { %v1004_v62 = vmax.f32 %v988_v57, 0.0 }
 0x22c   : > { %v1002_v8 = vmax.f32 %v986_v60, 0.0  ;;  %v1764_v9 = vpop.f32.mrb[8].mxu1 }
 0x22d   : > { %v968_v11 = vmul.f32 %v1764_v9, %v2155_v0  ;;  %v847_v12 = vpop.f32.mrb[9].mxu1  ;;  %v1016_v13 = vpack.c.bf16 %v1004_v62, %v1003_v61 }
 0x22e   : > { %v966_v15 = vmul.f32 %v2146_v31, %v847_v12  ;;  %v1765_v1 = vpop.f32.mrb[10].mxu1  ;;  %v1015_v2 = vpack.c.bf16 %v1002_v8, %v1001_v63 }
 0x22f   : > { %v991_v18 = vadd.f32 %v2135_v19, %v968_v11  ;;  %v969_v20 = vmul.f32 %v1765_v1, %v2160_v59  ;;  %v850_v21 = vpop.f32.mrb[11].mxu1 }
 0x230   : > { %v989_v24 = vadd.f32 %v2135_v19, %v966_v15  ;;  %v967_v25 = vmul.f32 %v2149_v35, %v850_v21  ;;  %1790 = vmatprep.mubr.bf16.mxu0 %v1015_v2 }
 0x231   : > { %v992_v26 = vadd.f32 %v2135_v19, %v969_v20  ;;  %1791 = vmatmul.mubr.bf16.gmra.mrb[20].mxu0 %v1016_v13  ;;  %v1007_v28 = vmax.f32 %v991_v18, 0.0 }
 0x232   : > { %v990_v27 = vadd.f32 %v2135_v19, %v967_v25  ;;  %v1005_v32 = vmax.f32 %v989_v24, 0.0 }
 0x233   : > { %v1008_v29 = vmax.f32 %v992_v26, 0.0 }
 0x234   : > { %v1006_v33 = vmax.f32 %v990_v27, 0.0  ;;  %v1768_v34 = vpop.f32.mrb[12].mxu1 }
 0x235   : > { %v972_v36 = vmul.f32 %v1768_v34, %v951_v30  ;;  %v863_v37 = vpop.f32.mrb[13].mxu1  ;;  %v1018_v38 = vpack.c.bf16 %v1008_v29, %v1007_v28 }
 0x236   : > { %v970_v40 = vmul.f32 %v2164_v14, %v863_v37  ;;  %v1769_v41 = vpop.f32.mrb[14].mxu1  ;;  %v1017_v50 = vpack.c.bf16 %v1006_v33, %v1005_v32 }
 0x237   : > { %v995_v51 = vadd.f32 %v2135_v19, %v972_v36  ;;  %v973_v52 = vmul.f32 %v1769_v41, %v956_v39  ;;  %v866_v53 = vpop.f32.mrb[15].mxu1 }
 0x238   : > { %v993_v54 = vadd.f32 %v2135_v19, %v970_v40  ;;  %v971_v55 = vmul.f32 %v2169_v23, %v866_v53  ;;  %1794 = vmatprep.mubr.bf16.mxu0 %v1017_v50 }
 0x239   : > { %v996_v56 = vadd.f32 %v2135_v19, %v973_v52  ;;  %1795 = vmatmul.mubr.bf16.gmra.mrb[24].mxu0 %v1018_v38  ;;  %v1011_v57 = vmax.f32 %v995_v51, 0.0 }
 0x23a   : > { %v994_v58 = vadd.f32 %v2135_v19, %v971_v55  ;;  %v1009_v61 = vmax.f32 %v993_v54, 0.0 }
 0x23b   : > { %v1012_v60 = vmax.f32 %v996_v56, 0.0 }
 0x23c   : > { %v1010_v62 = vmax.f32 %v994_v58, 0.0 }
 0x23d   : > { %v1020_v63 = vpack.c.bf16 %v1012_v60, %v1011_v57 }
 0x23e   : > { %v1019_v8 = vpack.c.bf16 %v1010_v62, %v1009_v61 }
 0x240   : > { %1798 = vmatprep.mubr.bf16.mxu0 %v1019_v8 }
 0x241   : > { %1799 = vmatmul.mubr.bf16.gmra.mrb[28].mxu0 %v1020_v63 }
 0x2fc   : > { %v1788_v9 = vpop.f32.mrb[16].mxu0 }
 0x2fd   : > { %v1119_v11 = vpop.f32.mrb[17].mxu0  ;;  %v1184_v13 = vmul.f32 %v1788_v9, %v2120_v4 }
 0x2fe   : > { %v1789_v12 = vpop.f32.mrb[18].mxu0  ;;  %v1182_v2 = vmul.f32 %v1119_v11, %v2118_v3 }
 0x2ff   : > { %v1185_v15 = vmul.f32 %v1789_v12, %v2124_v6  ;;  %v1122_v1 = vpop.f32.mrb[19].mxu0 }
 0x300   : > { %v1183_v19 = vmul.f32 %v1122_v1, %v2122_v5 }
 0x301   : > { %v1199_v18 = vpack.c.bf16 %v1185_v15, %v1184_v13 }
 0x302   : > { %v1198_v20 = vpack.c.bf16 %v1183_v19, %v1182_v2 }
 0x304   : > { %v1792_v21 = vpop.f32.mrb[20].mxu0  ;;  %1802 = vmatprep.subr.bf16.mxu1 %v1198_v20 }
 0x305   : > { %v1135_v24 = vpop.f32.mrb[21].mxu0  ;;  %v1188_v26 = vmul.f32 %v1792_v21, %v2130_v17 }
 0x306   : > { %v1793_v25 = vpop.f32.mrb[22].mxu0  ;;  %v1186_v29 = vmul.f32 %v1135_v24, %v2126_v7 }
 0x307   : > { %v1189_v27 = vmul.f32 %v1793_v25, %v2138_v22  ;;  %v1138_v28 = vpop.f32.mrb[23].mxu0 }
 0x308   : > { %v1187_v4 = vmul.f32 %v1138_v28, %v2128_v16 }
 0x309   : > { %v1201_v6 = vpack.c.bf16 %v1189_v27, %v1188_v26 }
 0x30a   : > { %v1200_v32 = vpack.c.bf16 %v1187_v4, %v1186_v29 }
 0x30c   : > { %v1796_v33 = vpop.f32.mrb[24].mxu0 }
 0x30d   : > { %v1151_v3 = vpop.f32.mrb[25].mxu0  ;;  %v1192_v5 = vmul.f32 %v1796_v33, %v2155_v0 }
 0x30e   : > { %v1797_v34 = vpop.f32.mrb[26].mxu0  ;;  %v1190_v38 = vmul.f32 %v1151_v3, %v2146_v31 }
 0x30f   : > { %v1193_v36 = vmul.f32 %v1797_v34, %v2160_v59  ;;  %v1154_v37 = vpop.f32.mrb[27].mxu0 }
 0x310   : > { %v1191_v17 = vmul.f32 %v1154_v37, %v2149_v35 }
 0x311   : > { %v1203_v22 = vpack.c.bf16 %v1193_v36, %v1192_v5 }
 0x312   : > { %v1202_v40 = vpack.c.bf16 %v1191_v17, %v1190_v38 }
 0x314   : > { %v1800_v41 = vpop.f32.mrb[28].mxu0 }
 0x315   : > { %v1167_v7 = vpop.f32.mrb[29].mxu0  ;;  %v1196_v16 = vmul.f32 %v1800_v41, %v951_v30 }
 0x316   : > { %v1801_v50 = vpop.f32.mrb[30].mxu0  ;;  %v1194_v53 = vmul.f32 %v1167_v7, %v2164_v14 }
 0x317   : > { %v1197_v51 = vmul.f32 %v1801_v50, %v956_v39  ;;  %v1170_v52 = vpop.f32.mrb[31].mxu0 }
 0x318   : > { %v1195_v54 = vmul.f32 %v1170_v52, %v2169_v23 }
 0x319   : > { %v1205_v0 = vpack.c.bf16 %v1197_v51, %v1196_v16 }
 0x31a   : > { %v1204_v55 = vpack.c.bf16 %v1195_v54, %v1194_v53 }
 0x31b   : > { %1879 = dma.done.wait [#allocation3 + $0x1], 1024 }
 0x31c   : > { %1880 = vsyncadd [#allocation3 + $0x1], 4294966272  ;;  %1803 = vmatpush3.bf16.msra.mxu1 %v1198_v20  ;;  %1872 = vset.pattern.permute.xlu1 %v1885_v10  ;;  %v1218_v31 = vld [vmem:[%s1966_s11 + $0x10] sm:$0xff]  ;;  %v1216_v35 = vld [vmem:[%s1966_s11] sm:$0xff] }
 0x31d   : > { %1804 = vmatprep.subr.bf16.mxu1 %v1199_v18  ;;  %1871 = vset.pattern.permute.xlu0 %v1885_v10  ;;  %v1219_v42 = vld [vmem:[%s1966_s11 + $0x18] sm:$0xff]  ;;  %v1217_v59 = vld [vmem:[%s1966_s11 + $0x8] sm:$0xff]  ;;  %v1220_v23 = vld [vmem:[%s1966_s11 + $0x20] sm:$0xff] }
 0x31e   : > { %1357 = vperm.xlu1 %1872, %v1218_v31   ;;  %1347 = vperm.xlu0 %1871, %v1216_v35   ;;  %v1221_v14 = vld [vmem:[%s1966_s11 + $0x28] sm:$0xff]  ;;  %v1223_v10 = vld [vmem:[%s1966_s11 + $0x38] sm:$0xff]  ;;  %v1222_v30 = vld [vmem:[%s1966_s11 + $0x30] sm:$0xff] }
 0x31f   : > { %v1225_v39 = vld [vmem:[%s1966_s11 + $0x48] sm:$0xff]  ;;  %v1224_v56 = vld [vmem:[%s1966_s11 + $0x40] sm:$0xff]  ;;  %v1227_v58 = vld [vmem:[%s1966_s11 + $0x58] sm:$0xff] }
 0x320   : > { %1805 = vmatpush3.bf16.msra.mxu1 %v1199_v18  ;;  %v1226_v57 = vld [vmem:[%s1966_s11 + $0x50] sm:$0xff]  ;;  %v1229_v60 = vld [vmem:[%s1966_s11 + $0x68] sm:$0xff]  ;;  %v1228_v61 = vld [vmem:[%s1966_s11 + $0x60] sm:$0xff] }
 0x321   : > { %1806 = vmatprep.subr.bf16.mxu1 %v1200_v32  ;;  %v1231_v62 = vld [vmem:[%s1966_s11 + $0x78] sm:$0xff]  ;;  %v1230_v63 = vld [vmem:[%s1966_s11 + $0x70] sm:$0xff] }
 0x322   : > { %1362 = vperm.xlu1 %1872, %v1219_v42   ;;  %1352 = vperm.xlu0 %1871, %v1217_v59  }
 0x324   : > { %1807 = vmatpush3.bf16.msra.mxu1 %v1200_v32 }
 0x325   : > { %1808 = vmatprep.subr.bf16.mxu1 %v1201_v6 }
 0x326   : > { %1372 = vperm.xlu1 %1872, %v1221_v14   ;;  %1367 = vperm.xlu0 %1871, %v1220_v23  }
 0x328   : > { %1809 = vmatpush3.bf16.msra.mxu1 %v1201_v6 }
 0x329   : > { %1810 = vmatprep.subr.bf16.mxu1 %v1202_v40 }
 0x32a   : > { %1382 = vperm.xlu1 %1872, %v1223_v10   ;;  %1377 = vperm.xlu0 %1871, %v1222_v30  }
 0x32c   : > { %1811 = vmatpush3.bf16.msra.mxu1 %v1202_v40 }
 0x32d   : > { %1812 = vmatprep.subr.bf16.mxu1 %v1203_v22 }
 0x32e   : > { %1392 = vperm.xlu1 %1872, %v1225_v39   ;;  %1387 = vperm.xlu0 %1871, %v1224_v56  }
 0x330   : > { %1813 = vmatpush3.bf16.msra.mxu1 %v1203_v22 }
 0x331   : > { %1814 = vmatprep.subr.bf16.mxu1 %v1204_v55 }
 0x332   : > { %1402 = vperm.xlu1 %1872, %v1227_v58   ;;  %1397 = vperm.xlu0 %1871, %v1226_v57  }
 0x334   : > { %1815 = vmatpush3.bf16.msra.mxu1 %v1204_v55 }
 0x335   : > { %1816 = vmatprep.subr.bf16.mxu1 %v1205_v0 }
 0x336   : > { %1412 = vperm.xlu1 %1872, %v1229_v60   ;;  %1407 = vperm.xlu0 %1871, %v1228_v61  }
 0x338   : > { %1817 = vmatpush3.bf16.msra.mxu1 %v1205_v0 }
 0x33a   : > { %1422 = vperm.xlu1 %1872, %v1231_v62   ;;  %1417 = vperm.xlu0 %1871, %v1230_v63  }
 0x33b   : > { %1819 = vmatmul.mubr.bf16.vlgmr.msra.gmra.mrb[16].mxu1 %v2040_v43 }
 0x33c   : > { %1822 = vmatprep.mubr.bf16.mxu1 %v2043_v44 }
 0x343   : > { %1823 = vmatmul.mubr.bf16.gmra.mrb[20].mxu1 %v2046_v45  ;;  %v2224_v45 = vld [vmem:[%s2267_s6] ss:$0 sm:$0xff] }
 0x344   : > { %1826 = vmatprep.mubr.bf16.mxu1 %v2049_v46 }
 0x34b   : > { %1827 = vmatmul.mubr.bf16.gmra.mrb[24].mxu1 %v2052_v47 }
 0x34c   : > { %1830 = vmatprep.mubr.bf16.mxu1 %v2055_v48 }
 0x353   : > { %1831 = vmatmul.mubr.bf16.gmra.mrb[28].mxu1 %v2058_v49 }
 0x39d   : > { %v1348_v8 = vpop.permute.xlu0 %1347  ;;  %v1358_v43 = vpop.permute.xlu1 %1357 }
 0x3a1   : > { %v1353_v9 = vpop.permute.xlu0 %1352  ;;  %v1363_v11 = vpop.permute.xlu1 %1362 }
 0x3a5   : > { %v1368_v44 = vpop.permute.xlu0 %1367  ;;  %v1373_v12 = vpop.permute.xlu1 %1372 }
 0x3a9   : > { %v1378_v13 = vpop.permute.xlu0 %1377  ;;  %v1383_v1 = vpop.permute.xlu1 %1382 }
 0x3ad   : > { %v1388_v26 = vpop.permute.xlu0 %1387  ;;  %v1393_v4 = vpop.permute.xlu1 %1392 }
 0x3b1   : > { %v1398_v17 = vpop.permute.xlu0 %1397  ;;  %v1403_v50 = vpop.permute.xlu1 %1402 }
 0x3b5   : > { %v1408_v31 = vpop.permute.xlu0 %1407  ;;  %v1413_v10 = vpop.permute.xlu1 %1412 }
 0x3b9   : > { %v1418_v62 = vpop.permute.xlu0 %1417 }
 0x40e   : > { %v1820_v15 = vpop.f32.mrb[16].mxu1 }
 0x40f   : > { %v1427_v46 = vmul.f32 %v1820_v15, %v1358_v43  ;;  %v1282_v47 = vpop.f32.mrb[17].mxu1 }
 0x410   : > { %v1425_v48 = vmul.f32 %v1348_v8, %v1282_v47  ;;  %v1821_v49 = vpop.f32.mrb[18].mxu1 }
 0x411   : > { %v1450_v2 = vadd.f32 %v2224_v45, %v1427_v46  ;;  %v1428_v19 = vmul.f32 %v1821_v49, %v1363_v11  ;;  %v1285_v18 = vpop.f32.mrb[19].mxu1  ;;  %v1423_v11 = vpop.permute.xlu1 %1422 }
 0x412   : > { %v1448_v20 = vadd.f32 %v2224_v45, %v1425_v48  ;;  %v1426_v21 = vmul.f32 %v1353_v9, %v1285_v18 }
 0x413   : > { %v1466_v24 = vmax.f32 %v1450_v2, 0.0  ;;  %v1451_v25 = vadd.f32 %v2224_v45, %v1428_v19 }
 0x414   : > { %v1464_v27 = vmax.f32 %v1448_v20, 0.0  ;;  %v1449_v28 = vadd.f32 %v2224_v45, %v1426_v21 }
 0x415   : > { %1482 = vst [vmem:[%s1976_s17 + $0x10] sm:$0xff] %v1466_v24  ;;  %v1467_v29 = vmax.f32 %v1451_v25, 0.0 }
 0x416   : > { %1480 = vst [vmem:[%s1976_s17] sm:$0xff] %v1464_v27  ;;  %v1465_v6 = vmax.f32 %v1449_v28, 0.0  ;;  %v1824_v32 = vpop.f32.mrb[20].mxu1 }
 0x417   : > { %1483 = vst [vmem:[%s1976_s17 + $0x18] sm:$0xff] %v1467_v29  ;;  %v1431_v33 = vmul.f32 %v1824_v32, %v1378_v13  ;;  %v1298_v3 = vpop.f32.mrb[21].mxu1 }
 0x418   : > { %1481 = vst [vmem:[%s1976_s17 + $0x8] sm:$0xff] %v1465_v6  ;;  %v1429_v34 = vmul.f32 %v1368_v44, %v1298_v3  ;;  %v1825_v5 = vpop.f32.mrb[22].mxu1 }
 0x419   : > { %v1454_v36 = vadd.f32 %v2224_v45, %v1431_v33  ;;  %v1432_v37 = vmul.f32 %v1825_v5, %v1383_v1  ;;  %v1301_v38 = vpop.f32.mrb[23].mxu1 }
 0x41a   : > { %v1452_v22 = vadd.f32 %v2224_v45, %v1429_v34  ;;  %v1430_v40 = vmul.f32 %v1373_v12, %v1301_v38 }
 0x41b   : > { %v1470_v41 = vmax.f32 %v1454_v36, 0.0  ;;  %v1455_v7 = vadd.f32 %v2224_v45, %v1432_v37 }
 0x41c   : > { %v1468_v16 = vmax.f32 %v1452_v22, 0.0  ;;  %v1453_v51 = vadd.f32 %v2224_v45, %v1430_v40 }
 0x41d   : > { %1486 = vst [vmem:[%s1976_s17 + $0x30] sm:$0xff] %v1470_v41  ;;  %v1471_v52 = vmax.f32 %v1455_v7, 0.0 }
 0x41e   : > { %1484 = vst [vmem:[%s1976_s17 + $0x20] sm:$0xff] %v1468_v16  ;;  %v1469_v53 = vmax.f32 %v1453_v51, 0.0  ;;  %v1828_v54 = vpop.f32.mrb[24].mxu1 }
 0x41f   : > { %1487 = vst [vmem:[%s1976_s17 + $0x38] sm:$0xff] %v1471_v52  ;;  %v1435_v0 = vmul.f32 %v1828_v54, %v1398_v17  ;;  %v1314_v55 = vpop.f32.mrb[25].mxu1 }
 0x420   : > { %1485 = vst [vmem:[%s1976_s17 + $0x28] sm:$0xff] %v1469_v53  ;;  %v1433_v35 = vmul.f32 %v1388_v26, %v1314_v55  ;;  %v1829_v42 = vpop.f32.mrb[26].mxu1 }
 0x421   : > { %v1458_v59 = vadd.f32 %v2224_v45, %v1435_v0  ;;  %v1436_v14 = vmul.f32 %v1829_v42, %v1403_v50  ;;  %v1317_v23 = vpop.f32.mrb[27].mxu1 }
 0x422   : > { %v1456_v30 = vadd.f32 %v2224_v45, %v1433_v35  ;;  %v1434_v39 = vmul.f32 %v1393_v4, %v1317_v23 }
 0x423   : > { %v1474_v56 = vmax.f32 %v1458_v59, 0.0  ;;  %v1459_v58 = vadd.f32 %v2224_v45, %v1436_v14 }
 0x424   : > { %v1472_v57 = vmax.f32 %v1456_v30, 0.0  ;;  %v1457_v60 = vadd.f32 %v2224_v45, %v1434_v39 }
 0x425   : > { %1490 = vst [vmem:[%s1976_s17 + $0x50] sm:$0xff] %v1474_v56  ;;  %v1475_v61 = vmax.f32 %v1459_v58, 0.0 }
 0x426   : > { %1488 = vst [vmem:[%s1976_s17 + $0x40] sm:$0xff] %v1472_v57  ;;  %v1473_v63 = vmax.f32 %v1457_v60, 0.0  ;;  %v1832_v8 = vpop.f32.mrb[28].mxu1 }
 0x427   : > { %1491 = vst [vmem:[%s1976_s17 + $0x58] sm:$0xff] %v1475_v61  ;;  %v1439_v43 = vmul.f32 %v1832_v8, %v1418_v62  ;;  %v1330_v9 = vpop.f32.mrb[29].mxu1 }
 0x428   : > { %1489 = vst [vmem:[%s1976_s17 + $0x48] sm:$0xff] %v1473_v63  ;;  %v1437_v44 = vmul.f32 %v1408_v31, %v1330_v9  ;;  %v1833_v12 = vpop.f32.mrb[30].mxu1 }
 0x429   : > { %v1462_v13 = vadd.f32 %v2224_v45, %v1439_v43  ;;  %v1440_v15 = vmul.f32 %v1833_v12, %v1423_v11  ;;  %v1333_v46 = vpop.f32.mrb[31].mxu1 }
 0x42a   : > { %v1460_v47 = vadd.f32 %v2224_v45, %v1437_v44  ;;  %v1438_v1 = vmul.f32 %v1413_v10, %v1333_v46 }
 0x42b   : > { %v1478_v48 = vmax.f32 %v1462_v13, 0.0  ;;  %v1463_v49 = vadd.f32 %v2224_v45, %v1440_v15 }
 0x42c   : > { %v1476_v2 = vmax.f32 %v1460_v47, 0.0  ;;  %v1461_v19 = vadd.f32 %v2224_v45, %v1438_v1 }
 0x42d   : > { %1494 = vst [vmem:[%s1976_s17 + $0x70] sm:$0xff] %v1478_v48  ;;  %v1479_v18 = vmax.f32 %v1463_v49, 0.0 }
 0x42e   : > { %1492 = vst [vmem:[%s1976_s17 + $0x60] sm:$0xff] %v1476_v2  ;;  %v1477_v20 = vmax.f32 %v1461_v19, 0.0 }
 0x42f   : > { %1495 = vst [vmem:[%s1976_s17 + $0x78] sm:$0xff] %v1479_v18 }
 0x430   : > { %1493 = vst [vmem:[%s1976_s17 + $0x68] sm:$0xff] %v1477_v20 }
 0x431 PF: > { %s17_s24 = sadd.s32 1, %s1883_s24  }
 0x432   : > { %p14_p4 = scmp.ge.s32.totalorder %s17_s24, 5  }
 0x434   :  { %16 = sbr.rel (!%p14_p4) target bundleno = 1 (0x1), region = 165 }
 0x43b   :  { %1517 = vsyncmov [#allocation3] }
 0x43e   :  { %s1518_s13 = vpop.sfrf %1517 }
 0x43f   :  { %p1636_p5 = scmp.ne.s32.totalorder %s1518_s13, 0 }
 0x441   :  { %1522 = shalt.err (%p1636_p5)  }
 0x442   :  { %1524 = vsyncmov [#allocation3 + $0x1] }
 0x445   :  { %s1525_s29 = vpop.sfrf %1524 }
 0x446   :  { %p1637_p6 = scmp.ne.s32.totalorder %s1525_s29, 0 }
 0x448   :  { %1529 = shalt.err (%p1637_p6)  }

</bundles_post_ra>
